<compile_context>
chip_gen: v7x
topology: tpu7x:2x2x1
jax: 0.10.0
libtpu: 0.0.40
codegen_flags: <defaults>
</compile_context>

<pallas_src>
import functools

import jax
import jax.numpy as jnp
from jax.experimental import pallas as pl
from jax.experimental.pallas import tpu as pltpu

RESIZE_SIZE = (448.0, 448.0)   # Predictor.resize_size
_LANE = 128
_SUBLANE = 8


def _round_up(x, m):
    return (x + m - 1) // m * m


def _vmem_capacity_bytes():
    try:
        return int(pltpu.get_tpu_info().vmem_capacity_bytes)
    except Exception:
        return 64 << 20          # conservative fallback (v7x per-TensorCore VMEM)


# ---------------------------------------------------------------------------
# Stage 1: HBM-bound pooling stream over x viewed as [R, S], R = B*C.
# Grid: (P spatial splits [parallel], row tiles [parallel], chunks [arbitrary]).
# ---------------------------------------------------------------------------
def _pool_kernel(x_ref, psum_ref, *, n_chunks, rem):
    k = pl.program_id(2)

    @pl.when(k == 0)
    def _init():
        psum_ref[...] = jnp.zeros_like(psum_ref)

    # bf16 (or f32) stream -> f32 accumulation.  The cast is free VPU filler
    # under the HBM-bound regime and keeps arithmetic in f32 (required on v5e).
    xb = x_ref[...].astype(jnp.float32)

    if rem == 0:
        psum_ref[...] += jnp.sum(xb, axis=-1, keepdims=True)
    else:
        # Ragged final chunk: mask out-of-range lanes (OOB block padding is
        # undefined).  Only the last chunk pays for the mask; the steady
        # state stays a pure load + add.
        @pl.when(k < n_chunks - 1)
        def _full():
            psum_ref[...] += jnp.sum(xb, axis=-1, keepdims=True)

        @pl.when(k == n_chunks - 1)
        def _tail():
            lane = jax.lax.broadcasted_iota(jnp.int32, xb.shape, 1)
            psum_ref[...] += jnp.sum(jnp.where(lane < rem, xb, 0.0),
                                     axis=-1, keepdims=True)


def _pool_partial_sums(x2d, *, spatial_tile=None):
    """Per-row spatial sums.  x2d: [R, S] (f32 or bf16).  Returns [P, R, 1] f32."""
    R, S = x2d.shape
    itemsize = jnp.dtype(x2d.dtype).itemsize

    # Row tiling: prefer a divisor of R that is a multiple of 8.  A ragged
    # last row tile would be safe anyway: garbage lands only in accumulator
    # rows that are masked on write-back and never read downstream.
    if R % _SUBLANE == 0:
        TR = min(R, 256)
        while R % TR != 0:
            TR -= _SUBLANE
    else:
        TR = R                        # full-dim block (legal for any R)
    n_row_tiles = pl.cdiv(R, TR)

    # Per-generation tile budget: v5e/v6e (128 MiB VMEM) -> 24 MiB tiles,
    # v7x (64 MiB) -> ~12.8 MiB.  Pallas double-buffers each tile.
    vmem_cap = _vmem_capacity_bytes()
    budget = int(min(vmem_cap // 5, 24 << 20))
    max_lanes = max(_LANE, (budget // (TR * itemsize)) // _LANE * _LANE)

    # Parallel spatial split so v7x's second TensorCore has work even when the
    # row axis yields a single tile (tiny batch / few channels).
    P = 2 if (n_row_tiles == 1 and S % (2 * _LANE) == 0) else 1
    S_p = S // P

    if spatial_tile is not None:
        TS = max(_LANE, (min(spatial_tile, S_p) // _LANE) * _LANE) \
            if S_p >= _LANE else S_p
    elif S_p >= _LANE:
        TS = min(max_lanes, (S_p // _LANE) * _LANE)
    else:
        TS = S_p                      # tiny image: single full-extent chunk

    if P == 2:
        # Contiguous per-split ranges need TS | S_p so split offsets stay
        # block-aligned and the hot loop stays mask-free.
        while S_p % TS != 0:
            TS -= _LANE
        if TS * 4 < min(max_lanes, S_p):
            # Divisibility forced pathologically small tiles: prefer a single
            # big ragged stream over tiny chunks.
            P, S_p = 1, S
            TS = min(max_lanes, (S // _LANE) * _LANE) if S >= _LANE else S

    n_chunks = pl.cdiv(S_p, TS)
    rem = S_p % TS

    x_index_map = lambda p, i, k: (i, p * n_chunks + k)
    x_spec = pl.BlockSpec((TR, TS), x_index_map)
    if TR * TS * itemsize <= (1 << 20) and n_chunks >= 8:
        # Very small chunks: deepen the pipeline so DMA issue latency stays hidden.
        x_spec = pl.BlockSpec((TR, TS), x_index_map, pipeline_mode=pl.Buffered(3))

    x_tile_bytes = TR * TS * itemsize
    vmem_limit = int(min(max(3 * x_tile_bytes + (2 << 20), 16 << 20),
                         vmem_cap * 3 // 4))

    kernel = functools.partial(_pool_kernel, n_chunks=n_chunks, rem=rem)
    return pl.pallas_call(
        kernel,
        out_shape=jax.ShapeDtypeStruct((P, R, 1), jnp.float32),
        grid=(P, n_row_tiles, n_chunks),
        in_specs=[x_spec],
        out_specs=pl.BlockSpec((None, TR, 1), lambda p, i, k: (p, i, 0)),
        compiler_params=pltpu.CompilerParams(
            dimension_semantics=("parallel", "parallel", "arbitrary"),
            vmem_limit_bytes=vmem_limit),
    )(x2d)


# ---------------------------------------------------------------------------
# Stage 2: tiny fused head -- synthetic model.inference + Predictor.forward's
# bbox rescale folded into one per-column scale.  Single block, all batch rows
# in one MXU pass.
# ---------------------------------------------------------------------------
def _head_kernel(pooled_ref, w_ref, b_ref, scale_ref, out_ref, *, inv_s, sigmoid_cols):
    pooled = pooled_ref[...] * inv_s                                   # [B, C_pad]
    raw = jnp.dot(pooled, w_ref[...],
                  preferred_element_type=jnp.float32) + b_ref[...]     # [B, D_pad]
    col = jax.lax.broadcasted_iota(jnp.int32, raw.shape, 1)
    act = jnp.where(col < sigmoid_cols, jax.nn.sigmoid(raw), raw)
    out_ref[...] = act * scale_ref[...]


def predictor_forward(x_nchw, w, b, image_size, num_preds, *, spatial_tile=None):
    """Pallas equivalent of Predictor.forward.

    x_nchw: [B, C, H, W] float32 or bfloat16 (preprocessed image; cast to bf16
            at the producer to halve HBM traffic).
    w, b:   synthetic inference-head weight [C, 6N] and bias [1, 6N].
    image_size: (width, height) of the original image (set by preprocess).
    """
    B, C, H, W = x_nchw.shape
    D = w.shape[1]
    N = num_preds
    assert D == 6 * N
    S = H * W

    # Stage 1 carries all the HBM traffic.  The reshape to [B*C, S] is a free
    # view of the contiguous NCHW tensor -- no padded copy of x.
    psum = _pool_partial_sums(x_nchw.reshape(B * C, S), spatial_tile=spatial_tile)

    # O(B*C) layout plumbing: combine the parallel spatial splits and expose a
    # [B, C_pad] pooled tensor for the head.  Tiny; not compute hoisting.
    C_pad = _round_up(C, _SUBLANE)
    D_pad = _round_up(D, _LANE)
    pooled = jnp.zeros((B, C_pad), jnp.float32).at[:, :C].set(
        jnp.sum(psum[:, :, 0], axis=0).reshape(B, C))

    # Zero-padded head params: padded columns get raw=0 and scale=0 -> output 0,
    # sliced off below.  Padded channels contribute 0 to the matmul.
    w_pad = jnp.zeros((C_pad, D_pad), jnp.float32).at[:C, :D].set(w.astype(jnp.float32))
    b_pad = jnp.zeros((1, D_pad), jnp.float32).at[:, :D].set(
        b.reshape(1, D).astype(jnp.float32))

    # Folded scale: (448-space -> normalized) * (normalized -> image_size):
    # score/cls -> 1, x-coords -> image_w, y-coords -> image_h.
    img_w, img_h = float(image_size[0]), float(image_size[1])
    ones = jnp.ones((N,), jnp.float32)
    combined = jnp.concatenate(
        [ones, img_w * ones, img_h * ones, img_w * ones, img_h * ones, ones])
    scale_pad = jnp.zeros((1, D_pad), jnp.float32).at[:, :D].set(combined)

    head = functools.partial(_head_kernel, inv_s=1.0 / float(S), sigmoid_cols=5 * N)
    out = pl.pallas_call(
        head,
        out_shape=jax.ShapeDtypeStruct((B, D_pad), jnp.float32),
    )(pooled, w_pad, b_pad, scale_pad)
    return out[:, :D]


def unpack_predictions(out, num_preds):
    """Rebuild Predictor.forward's list-of-[score, [xmin,ymin,xmax,ymax], cls_id]."""
    N = num_preds
    o = jax.device_get(out)
    preds = []
    for row in o:
        preds.append([
            [float(row[j]),
             [float(row[1 * N + j]), float(row[2 * N + j]),
              float(row[3 * N + j]), float(row[4 * N + j])],
             int(round(float(row[5 * N + j])))]
            for j in range(N)
        ])
    return preds


def reference_forward(x_nchw, w, b, image_size, num_preds):
    """Pure-JAX reference (mirrors Predictor.forward with the synthetic head)."""
    B, C, H, W = x_nchw.shape
    N = num_preds
    pooled = jnp.mean(x_nchw.astype(jnp.float32).reshape(B, C, H * W), axis=-1)
    raw = pooled @ w.astype(jnp.float32) + b.astype(jnp.float32)
    ones = jnp.ones((N,), jnp.float32)
    zeros = jnp.zeros((N,), jnp.float32)
    sig_mask = jnp.concatenate([ones, ones, ones, ones, ones, zeros])[None, :]
    post_scale = jnp.concatenate(
        [ones, RESIZE_SIZE[0] * ones, RESIZE_SIZE[1] * ones,
         RESIZE_SIZE[0] * ones, RESIZE_SIZE[1] * ones, ones])[None, :]
    act = jnp.where(sig_mask > 0, jax.nn.sigmoid(raw), raw) * post_scale
    img_w, img_h = float(image_size[0]), float(image_size[1])
    recon_scale = jnp.concatenate(
        [ones,
         (img_w / RESIZE_SIZE[0]) * ones, (img_h / RESIZE_SIZE[1]) * ones,
         (img_w / RESIZE_SIZE[0]) * ones, (img_h / RESIZE_SIZE[1]) * ones,
         ones])[None, :]
    return act * recon_scale


if __name__ == "__main__":
    key = jax.random.PRNGKey(0)
    k_x, k_w, k_b, k_x2 = jax.random.split(key, 4)

    # Small shapes: batch=2, channels=4, spatial=16x16, N=8 predictions/image.
    B, C, H, W = 2, 4, 16, 16
    N = 8
    D = 6 * N
    image_size = (640, 480)  # original (w, h), as set by Predictor.preprocess

    x = jax.random.normal(k_x, (B, C, H, W), dtype=jnp.float32)
    w_head = 0.1 * jax.random.normal(k_w, (C, D), dtype=jnp.float32)
    b_head = 0.01 * jax.random.normal(k_b, (1, D), dtype=jnp.float32)

    # 1) f32 stream (S=256 -> 2-way parallel spatial split, K=1 per split).
    out = jax.block_until_ready(predictor_forward(x, w_head, b_head, image_size, N))
    ref = reference_forward(x, w_head, b_head, image_size, N)
    assert jnp.allclose(out, ref, atol=1e-4, rtol=1e-4), "f32 kernel mismatch"

    # 2) bf16 stream (producer-side cast; halves HBM traffic), f32 accumulation.
    x_bf16 = x.astype(jnp.bfloat16)
    out_bf = jax.block_until_ready(
        predictor_forward(x_bf16, w_head, b_head, image_size, N))
    ref_bf = reference_forward(x_bf16, w_head, b_head, image_size, N)
    assert jnp.allclose(out_bf, ref_bf, atol=1e-4, rtol=1e-4), "bf16 kernel mismatch"

    # 3) Multi-chunk accumulation + ragged final chunk (20x20 -> S=400, TS=128).
    x2 = jax.random.normal(k_x2, (B, C, 20, 20), dtype=jnp.float32)
    out2 = jax.block_until_ready(
        predictor_forward(x2, w_head, b_head, image_size, N, spatial_tile=128))
    ref2 = reference_forward(x2, w_head, b_head, image_size, N)
    assert jnp.allclose(out2, ref2, atol=1e-4, rtol=1e-4), "ragged-chunk mismatch"

    _preds = unpack_predictions(out, N)  # list structure as in Predictor.forward
    print("KERNEL_OK")
</pallas_src>

<mosaic_0001>
module attributes {stable_mosaic.version = 11 : i64} {
  func.func @_pool_kernel(%arg0: i32, %arg1: i32, %arg2: i32, %arg3: memref<8x128xf32, #tpu.memory_space<vmem>>, %arg4: memref<1x8x1xf32, #tpu.memory_space<vmem>>) attributes {dimension_semantics = [#tpu.dimension_semantics<parallel>, #tpu.dimension_semantics<parallel>, #tpu.dimension_semantics<arbitrary>], iteration_bounds = array<i64: 2, 1, 1>, scalar_prefetch = 0 : i64, scratch_operands = 0 : i64, tpu.core_type = #tpu.core_type<tc>, window_params = [{transform_indices = @transform_0, window_bounds = array<i64: 8, 128>}, {transform_indices = @transform_1, window_bounds = array<i64: 1, 8, 1>}]} {
    %c0_i32 = arith.constant 0 : i32
    %0 = arith.cmpi eq, %arg2, %c0_i32 : i32
    %1 = arith.extui %0 : i1 to i32
    %c0_i32_0 = arith.constant 0 : i32
    %2 = arith.cmpi ne, %1, %c0_i32_0 : i32
    scf.if %2 {
      %cst_8 = arith.constant 0.000000e+00 : f32
      %12 = vector.broadcast %cst_8 : f32 to vector<8x1xf32>
      %c0_9 = arith.constant 0 : index
      %c0_10 = arith.constant 0 : index
      %c0_11 = arith.constant 0 : index
      %13 = vector.load %arg4[%c0_9, %c0_10, %c0_11] : memref<1x8x1xf32, #tpu.memory_space<vmem>>, vector<1x8x1xf32>
      %14 = vector.shape_cast %13 : vector<1x8x1xf32> to vector<8x1xf32>
      %15 = vector.shape_cast %12 : vector<8x1xf32> to vector<1x8x1xf32>
      tpu.vector_store %arg4[%c0_9, %c0_10, %c0_11], %15 {strides = array<i32>} : memref<1x8x1xf32, #tpu.memory_space<vmem>>, vector<1x8x1xf32>,
    } else {
    }
    %c0 = arith.constant 0 : index
    %c0_1 = arith.constant 0 : index
    %3 = vector.load %arg3[%c0, %c0_1] : memref<8x128xf32, #tpu.memory_space<vmem>>, vector<8x128xf32>
    %c0_2 = arith.constant 0 : index
    %c0_3 = arith.constant 0 : index
    %c0_4 = arith.constant 0 : index
    %4 = vector.load %arg4[%c0_2, %c0_3, %c0_4] : memref<1x8x1xf32, #tpu.memory_space<vmem>>, vector<1x8x1xf32>
    %5 = vector.shape_cast %4 : vector<1x8x1xf32> to vector<8x1xf32>
    %cst = arith.constant dense<0.000000e+00> : vector<8xf32>
    %6 = vector.multi_reduction <add>, %3, %cst [1] : vector<8x128xf32> to vector<8xf32>
    %7 = vector.shape_cast %6 : vector<8xf32> to vector<8x1xf32>
    %8 = arith.addf %5, %7 : vector<8x1xf32>
    %c0_5 = arith.constant 0 : index
    %c0_6 = arith.constant 0 : index
    %c0_7 = arith.constant 0 : index
    %9 = vector.load %arg4[%c0_5, %c0_6, %c0_7] : memref<1x8x1xf32, #tpu.memory_space<vmem>>, vector<1x8x1xf32>
    %10 = vector.shape_cast %9 : vector<1x8x1xf32> to vector<8x1xf32>
    %11 = vector.shape_cast %8 : vector<8x1xf32> to vector<1x8x1xf32>
    tpu.vector_store %arg4[%c0_5, %c0_6, %c0_7], %11 {strides = array<i32>} : memref<1x8x1xf32, #tpu.memory_space<vmem>>, vector<1x8x1xf32>,
    return
  }
  func.func @transform_0(%arg0: i32, %arg1: i32, %arg2: i32) -> (i32, i32) {
    %c1_i32 = arith.constant 1 : i32
    %0 = arith.muli %arg0, %c1_i32 : i32
    %1 = arith.addi %0, %arg2 : i32
    %c0_i32 = arith.constant 0 : i32
    return %arg1, %1 : i32, i32
  }
  func.func @transform_1(%arg0: i32, %arg1: i32, %arg2: i32) -> (i32, i32, i32) {
    %c0_i32 = arith.constant 0 : i32
    %c0_i32_0 = arith.constant 0 : i32
    return %arg0, %arg1, %c0_i32 : i32, i32, i32
  }
}

</mosaic_0001>

<bundles_post_ra>
// kernel: tpu_custom_call.1
= control target key start
LH: loop header
LB: loop body
LE: loop exit
PB: predicated region body
PF: predicated region fallthrough
CT: control target
= control target key end

     0   :  { %6 = vsyncpa [#allocation3], 0  ;;  %s555_s0 = inlined_call_operand.hbm [shape: f32[8,256], index: 0, kind: input, shape index: {}]   ;;  %s556_s1 = inlined_call_operand.vmem [shape: f32[2,8,1], index: 1, kind: output, shape index: {}]  }
   0x1   :  { %8 = vsyncpa [#allocation3 + $0x1], 0  ;;  %s430_s6 = smov 0   ;;  %s432_s7 = smov 0  }
   0x2   :  { %s434_s8 = smov 0   ;;  %s436_s9 = smov 0  }
   0x3   :  { %s438_s10 = smov 0   ;;  %s440_s11 = smov 0  }
   0x4 LB: > { %s269_s12 = sadd.s32 4294967295, %s416_s11   ;;  %s33_s13 = sadd.s32 1, %s412_s10  ;;  %s416_s11 = sphi %s440_s11, %s14_s11   ;;  %s412_s10 = sphi %s438_s10, %s566_s10   ;;  %s408_s9 = sphi %s436_s9, %s565_s9   ;;  %s404_s8 = sphi %s434_s8, %s564_s8   ;;  %s400_s7 = sphi %s432_s7, %s563_s7   ;;  %s396_s6 = sphi %s430_s6, %s562_s6  }
   0x5   : > { %p35_p0 = scmp.ge.s32.totalorder %s33_s13, 2  ;;  %s44_s14 = sadd.s32 1, %s404_s8 }
   0x6   : > { %p51_p1 = scmp.ne.s32.totalorder %s404_s8, %s400_s7  ;;  %p52_p2 = scmp.eq.s32.totalorder %s416_s11, 0 }
   0x7   : > { %s568_s13 = smov (%p35_p0, %s33_s13), 0  ;;  %p57_p4 = scmp.ne.s32.totalorder %s400_s7, %s396_s6 }
   0x8   : > { %p466_p3 = por %p52_p2, %p51_p1  ;;  %s40_s16 = ssub.s32 %s412_s10, %s568_s13 }
   0x9   : > { %p58_p5 = scmp.eq.s32.totalorder %s269_s12, 0  ;;  %p42_p6 = scmp.eq.s32.totalorder %s40_s16, 0 }
   0xa   : > { %p286_p8 = scmp.lt.s32.totalorder %s416_s11, 2  ;;  %s109_s19 = sand.u32 1, %s404_s8  }
   0xb   : > { %p473_p7 = por %p58_p5, %p57_p4  ;;  %s274_s20 = sshll.u32 %s412_s10, 7 }
   0xc   : > { %s479_s18 = scalar_select %p42_p6, %s404_s8, %s44_s14  }
   0xd   : > { %s273_s21 = sshll.u32 %s109_s19, 3  ;;  %s486_s24 = scalar_lea.hbm %s555_s0, %s274_s20 }
   0xe   : > { %s113_s25 = scalar_lea.vmem [#allocation2], %s273_s21  ;;  %p490_p9 = pnand %p286_p8, %p466_p3 }
   0xf   : > { %s123_s26 = sshll.u32 %s113_s25, 4  ;;  %s110_s28 = scalar_lea.sflag [#allocation3], %s109_s19  ;;  %s494_s26 = int_to_ptr.vmem [resolvable:$true] %s123_s26 }
  0x10   : > { %s336_s29 = scalar_lea.hbm %s486_s24, 128  ;;  %p338_p13 = pneg %p490_p9 }
  0x11   : > { %p337_p12 = scmp.ne.s32.totalorder %s486_s24, %s336_s29  ;;  %s341_s3 = scalar_lea.hbm %s555_s0, 256 }
  0x12   : > { %p342_p2 = scmp.lt.u32.totalorder %s486_s24, %s555_s0  ;;  %p343_p3 = scmp.lt.u32.totalorder %s341_s3, %s336_s29 }
  0x13   : > { %p339_p0 = pnand %p338_p13, %p337_p12  ;;  %p345_p5 = scmp.lt.u32.totalorder %s336_s29, %s486_s24 }
  0x14   : > { %p344_p4 = por %p343_p3, %p342_p2 }
  0x15   : > { %p340_p1 = pneg %p339_p0 }
  0x16   : > { %p346_p6 = por %p345_p5, %p344_p4 }
  0x18   : > { %p347_p8 = pnand %p346_p6, %p340_p1 }
  0x1a   : > { %350 = shalt.err (!%p347_p8)
}
  0x1b   : > { %s351_s6 = scalar_lea.vmem %s494_s26, 128  ;;  %s418_s12 = smov [#allocation2]  }
  0x1c   : > { %p352_p12 = scmp.ne.s32.totalorder %s494_s26, %s351_s6  ;;  %s356_s14 = sshll.u32 %s418_s12, 4  ;;  %s357_s14 = int_to_ptr.vmem [resolvable:$false] %s356_s14 }
  0x1d   : > { %s358_s15 = scalar_lea.vmem %s357_s14, 256  ;;  %p359_p11 = scmp.lt.s32.totalorder %s494_s26, %s357_s14 }
  0x1e   : > { %p354_p0 = pnand %p352_p12, %p338_p13  ;;  %p360_p2 = scmp.lt.s32.totalorder %s358_s15, %s351_s6 }
  0x20   : > { %p355_p10 = pneg %p354_p0  ;;  %p361_p3 = por %p360_p2, %p359_p11 }
  0x22   : > { %p362_p4 = pnand %p361_p3, %p355_p10 }
  0x24   : > { %365 = shalt.err (!%p362_p4)
}
  0x25   : > { %285 = dma.hbm_to_vmem [thread:$0]  (!%p490_p9), %s486_s24, 128, %s494_s26, %s110_s28  }
  0x26   : > { %p560_p1 = scmp.lt.s32.totalorder %s416_s11, 3  ;;  %p561_p5 = scmp.ge.s32.totalorder %s416_s11, 1 }
  0x28   : > { %p129_p13 = pnand %p561_p5, %p560_p1 }
  0x29   : > { %s134_s16 = sand.u32 (!%p129_p13), 1, %s400_s7  }
  0x2a   : > { %132 = sbr.rel (%p129_p13) target bundleno = 196 (0xc4), region = 24  ;;  %s276_s19 = sshll.u32 (!%p129_p13), %s134_s16, 3 }
  0x2b   : > { %s135_s20 = scalar_lea.sflag (!%p129_p13), [#allocation3], %s134_s16  ;;  %s138_s21 = scalar_lea.vmem (!%p129_p13), [#allocation2], %s276_s19 }
  0x31   : > { %391 = dma.done.wait (%p473_p7), %s135_s20, 128  }
  0x32   : > { %393 = vsyncadd (%p473_p7), %s135_s20, 4294967168  ;;  %p160_p10 = scmp.lt.s32.totalorder %s408_s9, 1  ;;  %vm171_vm0 = vcmask 7168   ;;  %v419_v0 = vmov 0.0   ;;  %v173_v1 = vld [vmem:[%s138_s21] sm:$0xff] }
  0x33   : > { %175 = vadd.xlane.f32.xlu0 %v173_v1 }
  0x34   : > { %s570_s9 = smov (!%p160_p10, %s408_s9), 1 }
  0x35   : > { %s277_s22 = sshll.u32 %s570_s9, 3 }
  0x36   : > { %s166_s25 = scalar_lea.vmem %s556_s1, %s277_s22 }
  0x37   : > { %172 = vst.msk [vmem:[%s166_s25] sm:$0xff] %vm171_vm0, %v419_v0 }
  0x3e   : > { %v174_v2 = vld [vmem:[%s166_s25] sm:$0xff] }
  0xc0   : > { %v176_v3 = vpop.xlane.xlu0 %175 }
  0xc1   : > { %v177_v4 = vadd.f32 %v176_v3, %v174_v2 }
  0xc3   : > { %179 = vst.msk [vmem:[%s166_s25] sm:$0xff] %vm171_vm0, %v177_v4 }
  0xc4 PF: > { %s14_s11 = sadd.s32 1, %s416_s11   ;;  %s562_s6 = smov %s400_s7 }
  0xc5   : > { %p11_p7 = scmp.ge.s32.totalorder %s14_s11, 4   ;;  %s563_s7 = smov %s404_s8 }
  0xc6   : > { %s564_s8 = smov %s479_s18  ;;  %s565_s9 = smov %s412_s10 }
  0xc7   : > { %s566_s10 = smov %s568_s13  ;;  %13 = sbr.rel (!%p11_p7) target bundleno = 4 (0x4), region = 68 }
  0xce   :  { %205 = vsyncpa [#allocation3], 1 }
  0xcf   :  { %207 = vsyncpa [#allocation3 + $0x1], 1 }

</bundles_post_ra>
